<compile_context>
chip_gen: v7x
topology: tpu7x:2x2x1
jax: 0.10.0
libtpu: 0.0.40
codegen_flags: <defaults>
</compile_context>

<pallas_src>
import jax
import jax.numpy as jnp
from jax.experimental import pallas as pl
from jax.experimental.pallas import tpu as pltpu


def _mish_kernel(x_ref, o_ref):
    x = x_ref[...].astype(jnp.float32)
    w = jnp.exp(-jnp.abs(x))                 # w in (0, 1]; never overflows
    w2 = w * w
    two_w = w + w
    pos = x >= 0.0
    # tanh(softplus(x)) = (e^{2x} + 2 e^x) / (e^{2x} + 2 e^x + 2)
    #   x >= 0 (w = e^-x):  (1 + 2w) / (1 + 2w + 2w^2)
    #   x <  0 (w = e^ x):  (2w + w^2) / (2 + 2w + w^2)
    num = two_w + jnp.where(pos, 1.0, w2)
    den = num + jnp.where(pos, w2 + w2, 2.0)
    o_ref[...] = (x * (num / den)).astype(o_ref.dtype)


def _mish_jnp(x):
    """Pure-JAX Mish (reference / fallback for lane-unaligned sizes)."""
    xf = x.astype(jnp.float32)
    return (xf * jnp.tanh(jax.nn.softplus(xf))).astype(x.dtype)


def _tpu_info():
    try:
        return pltpu.get_tpu_info()
    except Exception:
        return None


def _sublane_multiple(dtype) -> int:
    """Sublane packing factor: 8 for 4-byte, 16 for 2-byte, 32 for 1-byte."""
    itemsize = jnp.dtype(dtype).itemsize
    return max(8, 32 // max(itemsize, 1))


def _block_target_bytes() -> int:
    """Per-generation block size target (bigger blocks amortize ~0.35us/step)."""
    vmem = 128 << 20
    info = _tpu_info()
    if info is not None:
        vmem = getattr(info, "vmem_capacity_bytes", vmem) or vmem
    # 4 pipeline buffers (2 in + 2 out) of this size; keep headroom under the
    # explicit 32 MiB scoped-VMEM limit used below.
    return int(min(max(vmem // 16, 3 << 20), 6 << 20))


def _num_tensorcores() -> int:
    """Best-effort TensorCore count (2 on v7x, 1 on v5e/v6e); default 1."""
    info = _tpu_info()
    if info is not None:
        for name in ("num_cores", "core_count", "tensorcore_count",
                     "num_tensorcores"):
            v = getattr(info, name, None)
            if isinstance(v, int) and v > 0:
                return v
    return 1


def _pick_lanes(n: int, sub: int):
    """Widest lane count (multiple of 128) dividing n; prefer rows >= sublane."""
    divisors = [l for l in (1024, 512, 256, 128) if n % l == 0]
    if not divisors:
        return None
    for lanes in divisors:
        if n // lanes >= sub:
            return lanes
    return divisors[0]


def _pick_tile_rows(rows: int, lanes: int, elem_bytes: int, sub: int,
                    target_bytes: int, n_cores: int) -> int:
    if rows <= sub:
        return rows                              # one full-extent block
    max_tile = (rows // sub) * sub               # largest sublane-aligned tile
    tr = (target_bytes // (lanes * elem_bytes) // sub) * sub
    tr = max(sub, min(tr, max_tile))
    if n_cores > 1:
        # Multi-TC chips (v7x): make sure the "parallel" grid axis has at
        # least n_cores roughly even steps so neither core sits idle.
        if pl.cdiv(rows, tr) < n_cores:
            even = pl.cdiv(rows, n_cores)
            tr = max(sub, ((even + sub - 1) // sub) * sub)
            tr = min(tr, max_tile)
    return tr


def mish(x: jax.Array, *, donate: bool = False) -> jax.Array:
    """Elementwise Mish via Pallas. Falls back to jnp for lane-unaligned sizes."""
    orig_shape = x.shape
    orig_dtype = x.dtype
    n = x.size
    if n == 0:
        return x

    sub = _sublane_multiple(orig_dtype)
    lanes = _pick_lanes(n, sub)
    if lanes is None:
        # Element count not a multiple of 128; rare, keep it simple & copy-free.
        return _mish_jnp(x)

    elem_bytes = jnp.dtype(orig_dtype).itemsize
    rows = n // lanes
    tile_rows = _pick_tile_rows(rows, lanes, elem_bytes, sub,
                                _block_target_bytes(), _num_tensorcores())

    x2d = x.reshape(rows, lanes)                 # zero-copy layout change
    grid = (pl.cdiv(rows, tile_rows),)           # partial last block is masked

    extra = {}
    if donate:
        extra["input_output_aliases"] = {0: 0}   # reuse the input HBM buffer

    out2d = pl.pallas_call(
        _mish_kernel,
        out_shape=jax.ShapeDtypeStruct((rows, lanes), orig_dtype),
        grid=grid,
        in_specs=[pl.BlockSpec((tile_rows, lanes), lambda i: (i, 0))],
        out_specs=pl.BlockSpec((tile_rows, lanes), lambda i: (i, 0)),
        compiler_params=pltpu.CompilerParams(
            dimension_semantics=("parallel",),
            vmem_limit_bytes=32 << 20,
        ),
        cost_estimate=pl.CostEstimate(
            flops=11 * n,
            transcendentals=2 * n,
            bytes_accessed=2 * n * elem_bytes,
        ),
        **extra,
    )(x2d)

    return out2d.reshape(orig_shape)


if __name__ == "__main__":
    key = jax.random.PRNGKey(0)
    x = jax.random.normal(key, (2, 4, 16, 16), dtype=jnp.float32)

    y = mish(x)
    jax.block_until_ready(y)

    y_ref = _mish_jnp(x)
    assert y.shape == x.shape and y.dtype == x.dtype
    assert jnp.allclose(y, y_ref, atol=1e-4, rtol=1e-4)

    print("KERNEL_OK")
</pallas_src>

<mosaic_0001>
module attributes {stable_mosaic.version = 11 : i64} {
  func.func @_mish_kernel(%arg0: i32, %arg1: memref<8x256xf32, #tpu.memory_space<vmem>>, %arg2: memref<8x256xf32, #tpu.memory_space<vmem>>) attributes {dimension_semantics = [#tpu.dimension_semantics<parallel>], iteration_bounds = array<i64: 1>, scalar_prefetch = 0 : i64, scratch_operands = 0 : i64, tpu.core_type = #tpu.core_type<tc>, window_params = [{transform_indices = @transform_0, window_bounds = array<i64: 8, 256>}, {transform_indices = @transform_1, window_bounds = array<i64: 8, 256>}]} {
    %c0 = arith.constant 0 : index
    %c0_0 = arith.constant 0 : index
    %0 = vector.load %arg1[%c0, %c0_0] : memref<8x256xf32, #tpu.memory_space<vmem>>, vector<8x256xf32>
    %1 = math.absf %0 : vector<8x256xf32>
    %cst = arith.constant 0.000000e+00 : f32
    %2 = vector.broadcast %cst : f32 to vector<8x256xf32>
    %3 = arith.subf %2, %1 : vector<8x256xf32>
    %4 = math.exp %3 : vector<8x256xf32>
    %5 = arith.mulf %4, %4 : vector<8x256xf32>
    %6 = arith.addf %4, %4 : vector<8x256xf32>
    %cst_1 = arith.constant 0.000000e+00 : f32
    %7 = vector.broadcast %cst_1 : f32 to vector<8x256xf32>
    %8 = arith.cmpf oge, %0, %7 : vector<8x256xf32>
    %cst_2 = arith.constant 1.000000e+00 : f32
    %9 = vector.broadcast %cst_2 : f32 to vector<8x256xf32>
    %10 = arith.select %8, %9, %5 : vector<8x256xi1>, vector<8x256xf32>
    %11 = arith.addf %6, %10 : vector<8x256xf32>
    %12 = arith.addf %5, %5 : vector<8x256xf32>
    %cst_3 = arith.constant 2.000000e+00 : f32
    %13 = vector.broadcast %cst_3 : f32 to vector<8x256xf32>
    %14 = arith.select %8, %12, %13 : vector<8x256xi1>, vector<8x256xf32>
    %15 = arith.addf %11, %14 : vector<8x256xf32>
    %16 = arith.divf %11, %15 : vector<8x256xf32>
    %17 = arith.mulf %0, %16 : vector<8x256xf32>
    %c0_4 = arith.constant 0 : index
    %c0_5 = arith.constant 0 : index
    %18 = vector.load %arg2[%c0_4, %c0_5] : memref<8x256xf32, #tpu.memory_space<vmem>>, vector<8x256xf32>
    tpu.vector_store %arg2[%c0_4, %c0_5], %17 {strides = array<i32>} : memref<8x256xf32, #tpu.memory_space<vmem>>, vector<8x256xf32>,
    return
  }
  func.func @transform_0(%arg0: i32) -> (i32, i32) {
    %c0_i32 = arith.constant 0 : i32
    %c0_i32_0 = arith.constant 0 : i32
    return %arg0, %c0_i32 : i32, i32
  }
  func.func @transform_1(%arg0: i32) -> (i32, i32) {
    %c0_i32 = arith.constant 0 : i32
    %c0_i32_0 = arith.constant 0 : i32
    return %arg0, %c0_i32 : i32, i32
  }
}

</mosaic_0001>

<bundles_post_ra>
// kernel: tpu_custom_call.1
= control target key start
LH: loop header
LB: loop body
LE: loop exit
PB: predicated region body
PF: predicated region fallthrough
CT: control target
= control target key end

     0   :  { %6 = vsyncpa [#allocation3], 0  ;;  %s164_s0 = inlined_call_operand.hbm [shape: f32[8,256], index: 0, kind: input, shape index: {}]   ;;  %s165_s1 = inlined_call_operand.hbm [shape: f32[8,256], index: 1, kind: output, shape index: {}]  }
   0x1   :  { %7 = vsyncpa [#allocation4], 0  ;;  %s128_s6 = smov [#allocation2]   ;;  %s80_s10 = scalar_lea.hbm %s164_s0, 256 }
   0x2   :  { %s14_s7 = sshll.u32 %s128_s6, 4  ;;  %p81_p0 = scmp.ne.s32.totalorder %s164_s0, %s80_s10  ;;  %s15_s7 = int_to_ptr.vmem [resolvable:$true] %s14_s7 }
   0x3   :  { %p84_p1 = scmp.lt.u32.totalorder %s80_s10, %s164_s0 }
   0x5   :  { %p86_p2 = pnand %p84_p1, %p81_p0 }
   0x7   :  { %89 = shalt.err (!%p86_p2)
}
   0x8   :  { %s90_s15 = scalar_lea.vmem %s15_s7, 256  ;;  %p95_p4 = scmp.lt.s32.totalorder %s15_s7, %s15_s7 }
   0x9   :  { %p91_p3 = scmp.ne.s32.totalorder %s15_s7, %s90_s15  ;;  %p96_p5 = scmp.lt.s32.totalorder %s90_s15, %s90_s15 }
   0xb   :  { %p97_p6 = por %p96_p5, %p95_p4 }
   0xd   :  { %p98_p7 = pnand %p97_p6, %p91_p3 }
   0xf   :  { %101 = shalt.err (!%p98_p7)
}
  0x10   :  { %17 = dma.hbm_to_vmem [thread:$0]  %s164_s0, 256, %s15_s7, [#allocation3]  }
  0x11   :  { %124 = dma.done.wait [#allocation3], 256  }
  0x12   :  { %125 = vsyncadd [#allocation3], 4294967040  ;;  %v21_v0 = vld [vmem:[#allocation2] sm:$0xff]  ;;  %v22_v1 = vld [vmem:[#allocation2 + $0x8] sm:$0xff]  ;;  %s129_s0 = smov [#allocation5]  }
  0x13   :  { %v23_v2 = vand.u32 2147483647, %v21_v0  ;;  %v24_v3 = vand.u32 2147483647, %v22_v1  ;;  %vm35_vm0 = vcmp.ge.f32.partialorder %v21_v0, 0.0  ;;  %vm36_vm1 = vcmp.ge.f32.partialorder %v22_v1, 0.0 }
  0x14   :  { %s61_s18 = sshll.u32 %s129_s0, 4  ;;  %s62_s18 = int_to_ptr.vmem [resolvable:$true] %s61_s18 }
  0x15   :  { %v25_v4 = vsub.f32 0.0, %v23_v2  ;;  %v26_v5 = vsub.f32 0.0, %v24_v3  ;;  %s102_s19 = scalar_lea.vmem %s62_s18, 256  ;;  %p107_p9 = scmp.lt.s32.totalorder %s62_s18, %s62_s18 }
  0x16   :  { %p103_p8 = scmp.ne.s32.totalorder %s62_s18, %s102_s19  ;;  %p108_p10 = scmp.lt.s32.totalorder %s102_s19, %s102_s19 }
  0x17   :  { %v27_v6 = vmul.f32 1.442695, %v25_v4  ;;  %v29_v7 = vmul.f32 1.442695, %v26_v5 }
  0x18   :  { %p109_p11 = por %p108_p10, %p107_p9 }
  0x19   :  { %72 = vpow2.f32 %v27_v6 }
  0x1a   :  { %74 = vpow2.f32 %v29_v7  ;;  %p110_p12 = pnand %p109_p11, %p103_p8 }
  0x23   :  { %v73_v8 = vpop.eup %72 }
  0x24   :  { %v75_v9 = vpop.eup %74  ;;  %v31_v10 = vmul.f32 %v73_v8, %v73_v8  ;;  %v33_v11 = vadd.f32 %v73_v8, %v73_v8 }
  0x25   :  { %v32_v12 = vmul.f32 %v75_v9, %v75_v9  ;;  %v34_v13 = vadd.f32 %v75_v9, %v75_v9 }
  0x26   :  { %v37_v14 = vsel %vm35_vm0, 1.0, %v31_v10  ;;  %v41_v15 = vadd.f32 %v31_v10, %v31_v10 }
  0x27   :  { %v39_v16 = vadd.f32 %v37_v14, %v33_v11  ;;  %v38_v17 = vsel %vm36_vm1, 1.0, %v32_v12  ;;  %v42_v18 = vadd.f32 %v32_v12, %v32_v12 }
  0x28   :  { %v43_v19 = vsel %vm35_vm0, %v41_v15, 2.0  ;;  %v40_v20 = vadd.f32 %v38_v17, %v34_v13 }
  0x29   :  { %v45_v21 = vadd.f32 %v43_v19, %v39_v16  ;;  %v44_v22 = vsel %vm36_vm1, %v42_v18, 2.0 }
  0x2a   :  { %v46_v23 = vadd.f32 %v44_v22, %v40_v20 }
  0x2b   :  { %76 = vrcp.f32 %v45_v21 }
  0x2c   :  { %78 = vrcp.f32 %v46_v23 }
  0x35   :  { %v77_v24 = vpop.eup %76 }
  0x36   :  { %v79_v25 = vpop.eup %78  ;;  %v48_v26 = vmul.f32 %v77_v24, %v39_v16 }
  0x37   :  { %v50_v27 = vmul.f32 %v79_v25, %v40_v20 }
  0x38   :  { %v51_v28 = vmul.f32 %v48_v26, %v21_v0 }
  0x39   :  { %v52_v29 = vmul.f32 %v50_v27, %v22_v1 }
  0x3a   :  { %53 = vst [vmem:[#allocation5] sm:$0xff] %v51_v28 }
  0x3b   :  { %54 = vst [vmem:[#allocation5 + $0x8] sm:$0xff] %v52_v29 }
  0x3c   :  { %113 = shalt.err (!%p110_p12)
}
  0x3d   :  { %s114_s22 = scalar_lea.hbm %s165_s1, 256 }
  0x3e   :  { %p115_p13 = scmp.ne.s32.totalorder %s165_s1, %s114_s22  ;;  %p118_p0 = scmp.lt.u32.totalorder %s114_s22, %s165_s1 }
  0x40   :  { %p120_p1 = pnand %p118_p0, %p115_p13 }
  0x42   :  { %123 = shalt.err (!%p120_p1)
}
  0x43   :  { %64 = dma.vmem_to_hbm [thread:$0]  %s62_s18, 256, %s165_s1, [#allocation4]  }
  0x44   :  { %126 = dma.done.wait [#allocation4], 256  }
  0x45   :  { %127 = vsyncadd [#allocation4], 4294967040 }
  0x46   :  { %68 = vsyncpa [#allocation3], 1 }
  0x47   :  { %69 = vsyncpa [#allocation4], 1 }

</bundles_post_ra>
